<compile_context>
chip_gen: v6e
topology: v6e:2x2x1
jax: 0.10.0
libtpu: 0.0.40
codegen_flags: <defaults>
</compile_context>

<pallas_src>
import functools

import jax
import jax.numpy as jnp
from jax.experimental import pallas as pl
from jax.experimental.pallas import tpu as pltpu

_MIB = 1024 * 1024


def _non_contrastive_kernel(logits_ref, targets_ref, ce_ref, tsum_ref, ent_ref,
                            *, batch_size):
    """One batch tile: lane-dense per-row CE + per-tile partial reductions.

    No cross-step VMEM state -> the batch grid axis is safely "parallel".
    """
    pid = pl.program_id(0)

    logits = logits_ref[...].astype(jnp.float32)     # [TB, C]
    targets = targets_ref[...].astype(jnp.float32)   # [TB, C]
    TB, C = logits.shape

    # Valid-row mask for a (possibly partial) last tile: padded rows may hold
    # arbitrary data and must never reach the partial sums.  (Their ce values
    # land in the padded tail of the (grid, 1, TB) output and are sliced off
    # in the wrapper.)
    row = jax.lax.broadcasted_iota(jnp.int32, (TB, 1), 0)
    valid = (pid * TB + row) < batch_size            # [TB, 1]

    # --- softmax statistics over classes (lane axis) ---
    m = jnp.max(logits, axis=1, keepdims=True)       # [TB, 1]
    z = logits - m
    ez = jnp.exp(z)
    se = jnp.sum(ez, axis=1, keepdims=True)          # [TB, 1]
    log_se = jnp.log(se)
    lse = log_se + m                                 # [TB, 1]

    # --- hard label: argmax(targets, -1), first index on ties (torch.max) ---
    col = jax.lax.broadcasted_iota(jnp.int32, (TB, C), 1)
    tmax = jnp.max(targets, axis=1, keepdims=True)
    idx_cand = jnp.where(targets == tmax, col, C)
    max_idx = jnp.min(idx_cand, axis=1, keepdims=True)          # [TB, 1]
    sel_logit = jnp.sum(jnp.where(col == max_idx, logits, 0.0),
                        axis=1, keepdims=True)                  # [TB, 1]

    # per-sample cross entropy = logsumexp - selected logit, stored lane-dense
    # as a (1, 1, TB) row so the writeback is an unmasked contiguous store.
    ce = lse - sel_logit                                         # [TB, 1]
    ce_ref[...] = jnp.transpose(ce).reshape(1, 1, TB)

    # --- per-tile partials (final reduction happens in the JAX wrapper) ---
    # en_loss_img: fused row entropy, no probs/log-probs materialization:
    #   -sum_j p_j log p_j = log(se) - sum_j(ez_j * z_j) / se
    ent = log_se - jnp.sum(ez * z, axis=1, keepdims=True) / se   # [TB, 1]
    ent_ref[...] = jnp.sum(jnp.where(valid, ent, 0.0)).reshape(1, 1, 1)

    # en_loss_cap: per-tile column-sum of targets.
    tsum = jnp.sum(jnp.where(valid, targets, 0.0), axis=0, keepdims=True)  # [1, C]
    tsum_ref[...] = tsum.reshape(1, 1, C)


def _vmem_budget_bytes():
    """Per-generation (scoped-VMEM limit, double-buffered input budget)."""
    try:
        info = pltpu.get_tpu_info()
        vmem_cap = getattr(info, "vmem_capacity_bytes", 64 * _MIB)
    except Exception:  # no TPU visible at trace time -> conservative v7x-sized
        vmem_cap = 64 * _MIB
    # v5e/v6e (128 MiB/TC) -> 64 MiB limit; v7x (64 MiB/TC) -> 40 MiB limit,
    # leaving headroom for compiler scratch.
    vmem_limit = min((vmem_cap * 5) // 8, 64 * _MIB)
    # Double-buffered inputs (2 arrays x 2 pipeline buffers) get ~3/4 of the
    # limit; the lane-dense outputs / per-tile partials are tiny.
    input_budget = (vmem_limit * 3) // 4
    return int(vmem_limit), int(input_budget)


def _choose_tb(B, C, itemsizes, input_budget):
    """Largest batch tile whose double-buffered input footprint fits the budget.

    Dtype-aware (bf16 tiles can be twice as tall as f32 for the same VMEM),
    rounded to the sublane packing of the narrowest input dtype, and with no
    artificial row cap: the kernel is HBM-bandwidth bound, so bigger steps
    amortize the ~0.35 us per-grid-step overhead.
    """
    bytes_per_row = C * sum(itemsizes)             # one row of every input
    sublane = 32 // min(itemsizes)                 # 8 / 16 / 32
    tb = input_budget // (2 * bytes_per_row)       # 2 pipeline buffers
    tb = max(sublane, (int(tb) // sublane) * sublane)
    if tb >= B:
        return B                                   # single full-batch tile
    return tb


def non_contrastive_loss(logits, targets, tb=None):
    """Hard-label branch of NonContrastiveLoss.forward.

    Args:
      logits:  [B, C] float array.
      targets: [B, C] float array (probability-like; argmax used as hard label).
      tb:      optional batch-tile override.
    Returns:
      (ce_loss [B], en_loss_cap scalar, en_loss_img scalar), all float32.
    """
    B, C = logits.shape
    assert targets.shape == (B, C)

    itemsizes = (logits.dtype.itemsize, targets.dtype.itemsize)
    vmem_limit, input_budget = _vmem_budget_bytes()

    if tb is None:
        TB = _choose_tb(B, C, itemsizes, input_budget)
    else:
        sublane = 32 // min(itemsizes)
        TB = min(int(tb), B)
        if TB < B:
            TB = max(sublane, (TB // sublane) * sublane)
    grid_b = pl.cdiv(B, TB)

    kernel = functools.partial(_non_contrastive_kernel, batch_size=B)

    bytes_in = B * C * sum(itemsizes)
    cost = pl.CostEstimate(
        flops=10 * B * C,
        transcendentals=2 * B * C,
        bytes_accessed=bytes_in + 4 * (grid_b * TB + grid_b * C + grid_b),
    )

    out_shapes = (
        jax.ShapeDtypeStruct((grid_b, 1, TB), jnp.float32),  # ce (lane-dense, padded)
        jax.ShapeDtypeStruct((grid_b, 1, C), jnp.float32),   # per-tile sum(targets, 0)
        jax.ShapeDtypeStruct((grid_b, 1, 1), jnp.float32),   # per-tile row-entropy sum
    )

    ce_t, tsum_p, ent_p = pl.pallas_call(
        kernel,
        out_shape=out_shapes,
        grid_spec=pltpu.PrefetchScalarGridSpec(
            num_scalar_prefetch=0,
            grid=(grid_b,),
            in_specs=[
                pl.BlockSpec((TB, C), lambda i: (i, 0)),
                pl.BlockSpec((TB, C), lambda i: (i, 0)),
            ],
            out_specs=(
                pl.BlockSpec((1, 1, TB), lambda i: (i, 0, 0)),
                pl.BlockSpec((1, 1, C), lambda i: (i, 0, 0)),
                pl.BlockSpec((1, 1, 1), lambda i: (i, 0, 0)),
            ),
        ),
        compiler_params=pltpu.CompilerParams(
            dimension_semantics=("parallel",),     # independent tiles -> megacore OK
            vmem_limit_bytes=vmem_limit,
        ),
        cost_estimate=cost,
    )(logits, targets)

    # Tiny O(grid*C) epilogue in plain JAX (keeps the kernel's grid axis parallel).
    ce = ce_t.reshape(-1)[:B]                                      # drop padded rows
    mean_t = jnp.maximum(jnp.sum(tsum_p[:, 0, :], axis=0) / B, 1e-8)
    cap = -jnp.sum(mean_t * jnp.log(mean_t))
    img = jnp.sum(ent_p) / B
    return ce, cap, img


def _reference(logits, targets):
    """Pure-JAX reference mirroring the PyTorch module (clamped entropies)."""
    logits = logits.astype(jnp.float32)
    targets = targets.astype(jnp.float32)
    lse = jax.scipy.special.logsumexp(logits, axis=1)
    max_idx = jnp.argmax(targets, axis=-1)
    ce = lse - jnp.take_along_axis(logits, max_idx[:, None], axis=1)[:, 0]
    mt = jnp.maximum(jnp.mean(targets, axis=0), 1e-8)
    cap = -jnp.sum(mt * jnp.log(mt))
    probs = jax.nn.softmax(logits, axis=1)
    pc = jnp.maximum(probs, 1e-8)
    img = jnp.mean(-jnp.sum(pc * jnp.log(pc), axis=1))
    return ce, cap, img


if __name__ == "__main__":
    key = jax.random.PRNGKey(0)
    k1, k2, k3, k4 = jax.random.split(key, 4)

    # --- small shape, single tile ---
    B, C = 8, 16
    logits = jax.random.normal(k1, (B, C), dtype=jnp.float32)
    targets = jax.nn.softmax(jax.random.normal(k2, (B, C), dtype=jnp.float32), axis=1)

    ce, cap, img = non_contrastive_loss(logits, targets)
    jax.block_until_ready((ce, cap, img))

    ce_r, cap_r, img_r = _reference(logits, targets)
    assert jnp.allclose(ce, ce_r, atol=1e-5, rtol=1e-5)
    assert jnp.allclose(cap, cap_r, atol=1e-5, rtol=1e-5)
    assert jnp.allclose(img, img_r, atol=1e-5, rtol=1e-5)

    # --- multi-tile path with a partial last tile (exercises "parallel"
    #     per-tile partials + valid-row masking + padded-ce slicing) ---
    B2, C2 = 72, 128
    logits2 = jax.random.normal(k3, (B2, C2), dtype=jnp.float32)
    targets2 = jax.nn.softmax(jax.random.normal(k4, (B2, C2), dtype=jnp.float32), axis=1)

    ce2, cap2, img2 = non_contrastive_loss(logits2, targets2, tb=32)
    jax.block_until_ready((ce2, cap2, img2))

    ce2_r, cap2_r, img2_r = _reference(logits2, targets2)
    assert jnp.allclose(ce2, ce2_r, atol=1e-5, rtol=1e-5)
    assert jnp.allclose(cap2, cap2_r, atol=1e-5, rtol=1e-5)
    assert jnp.allclose(img2, img2_r, atol=1e-5, rtol=1e-5)

    print("KERNEL_OK")
</pallas_src>

<mosaic_0001>
module attributes {stable_mosaic.version = 11 : i64} {
  func.func @_non_contrastive_kernel(%arg0: i32, %arg1: memref<8x16xf32, #tpu.memory_space<vmem>>, %arg2: memref<8x16xf32, #tpu.memory_space<vmem>>, %arg3: memref<1x1x8xf32, #tpu.memory_space<vmem>>, %arg4: memref<1x1x16xf32, #tpu.memory_space<vmem>>, %arg5: memref<1x1x1xf32, #tpu.memory_space<vmem>>) attributes {dimension_semantics = [#tpu.dimension_semantics<parallel>], iteration_bounds = array<i64: 1>, scalar_prefetch = 0 : i64, scratch_operands = 0 : i64, tpu.core_type = #tpu.core_type<tc>, window_params = [{transform_indices = @transform_0, window_bounds = array<i64: 8, 16>}, {transform_indices = @transform_1, window_bounds = array<i64: 8, 16>}, {transform_indices = @transform_2, window_bounds = array<i64: 1, 1, 8>}, {transform_indices = @transform_3, window_bounds = array<i64: 1, 1, 16>}, {transform_indices = @transform_4, window_bounds = array<i64: 1, 1, 1>}]} {
    %c0 = arith.constant 0 : index
    %c0_0 = arith.constant 0 : index
    %0 = vector.load %arg1[%c0, %c0_0] : memref<8x16xf32, #tpu.memory_space<vmem>>, vector<8x16xf32>
    %c0_1 = arith.constant 0 : index
    %c0_2 = arith.constant 0 : index
    %1 = vector.load %arg2[%c0_1, %c0_2] : memref<8x16xf32, #tpu.memory_space<vmem>>, vector<8x16xf32>
    %2 = tpu.iota {dimensions = array<i32: 0>} : vector<8x1xi32>
    %c8_i32 = arith.constant 8 : i32
    %3 = arith.muli %arg0, %c8_i32 : i32
    %4 = vector.broadcast %3 : i32 to vector<8x1xi32>
    %5 = arith.addi %4, %2 : vector<8x1xi32>
    %c8_i32_3 = arith.constant 8 : i32
    %6 = vector.broadcast %c8_i32_3 : i32 to vector<8x1xi32>
    %7 = arith.cmpi slt, %5, %6 : vector<8x1xi32>
    %cst = arith.constant dense<0xFF800000> : vector<8xf32>
    %8 = vector.multi_reduction <maximumf>, %0, %cst [1] : vector<8x16xf32> to vector<8xf32>
    %9 = vector.shape_cast %8 : vector<8xf32> to vector<8x1xf32>
    %10 = vector.broadcast %9 : vector<8x1xf32> to vector<8x16xf32>
    %11 = arith.subf %0, %10 : vector<8x16xf32>
    %12 = math.exp %11 : vector<8x16xf32>
    %cst_4 = arith.constant dense<0.000000e+00> : vector<8xf32>
    %13 = vector.multi_reduction <add>, %12, %cst_4 [1] : vector<8x16xf32> to vector<8xf32>
    %14 = vector.shape_cast %13 : vector<8xf32> to vector<8x1xf32>
    %15 = math.log %14 : vector<8x1xf32>
    %16 = arith.addf %15, %9 : vector<8x1xf32>
    %17 = tpu.iota {dimensions = array<i32: 1>} : vector<8x16xi32>
    %cst_5 = arith.constant dense<0xFF800000> : vector<8xf32>
    %18 = vector.multi_reduction <maximumf>, %1, %cst_5 [1] : vector<8x16xf32> to vector<8xf32>
    %19 = vector.shape_cast %18 : vector<8xf32> to vector<8x1xf32>
    %20 = vector.broadcast %19 : vector<8x1xf32> to vector<8x16xf32>
    %21 = arith.cmpf oeq, %1, %20 : vector<8x16xf32>
    %c16_i32 = arith.constant 16 : i32
    %22 = vector.broadcast %c16_i32 : i32 to vector<8x16xi32>
    %23 = arith.select %21, %17, %22 : vector<8x16xi1>, vector<8x16xi32>
    %cst_6 = arith.constant dense<2147483647> : vector<8xi32>
    %24 = vector.multi_reduction <minsi>, %23, %cst_6 [1] : vector<8x16xi32> to vector<8xi32>
    %25 = vector.shape_cast %24 : vector<8xi32> to vector<8x1xi32>
    %26 = vector.broadcast %25 : vector<8x1xi32> to vector<8x16xi32>
    %27 = arith.cmpi eq, %17, %26 : vector<8x16xi32>
    %cst_7 = arith.constant 0.000000e+00 : f32
    %28 = vector.broadcast %cst_7 : f32 to vector<8x16xf32>
    %29 = arith.select %27, %0, %28 : vector<8x16xi1>, vector<8x16xf32>
    %cst_8 = arith.constant dense<0.000000e+00> : vector<8xf32>
    %30 = vector.multi_reduction <add>, %29, %cst_8 [1] : vector<8x16xf32> to vector<8xf32>
    %31 = vector.shape_cast %30 : vector<8xf32> to vector<8x1xf32>
    %32 = arith.subf %16, %31 : vector<8x1xf32>
    %33 = tpu.transpose %32, [1, 0] : vector<8x1xf32> -> vector<1x8xf32>
    %34 = vector.shape_cast %33 : vector<1x8xf32> to vector<1x1x8xf32>
    %c0_9 = arith.constant 0 : index
    %c0_10 = arith.constant 0 : index
    %c0_11 = arith.constant 0 : index
    %35 = vector.load %arg3[%c0_9, %c0_10, %c0_11] : memref<1x1x8xf32, #tpu.memory_space<vmem>>, vector<1x1x8xf32>
    tpu.vector_store %arg3[%c0_9, %c0_10, %c0_11], %34 {strides = array<i32>} : memref<1x1x8xf32, #tpu.memory_space<vmem>>, vector<1x1x8xf32>,
    %36 = arith.mulf %12, %11 : vector<8x16xf32>
    %cst_12 = arith.constant dense<0.000000e+00> : vector<8xf32>
    %37 = vector.multi_reduction <add>, %36, %cst_12 [1] : vector<8x16xf32> to vector<8xf32>
    %38 = vector.shape_cast %37 : vector<8xf32> to vector<8x1xf32>
    %39 = arith.divf %38, %14 : vector<8x1xf32>
    %40 = arith.subf %15, %39 : vector<8x1xf32>
    %cst_13 = arith.constant 0.000000e+00 : f32
    %41 = vector.broadcast %cst_13 : f32 to vector<8x1xf32>
    %42 = arith.select %7, %40, %41 : vector<8x1xi1>, vector<8x1xf32>
    %43 = vector.shape_cast %42 : vector<8x1xf32> to vector<1x8x1xf32>
    %cst_14 = arith.constant dense<0.000000e+00> : vector<1xf32>
    %44 = vector.multi_reduction <add>, %43, %cst_14 [1, 2] : vector<1x8x1xf32> to vector<1xf32>
    %45 = vector.shape_cast %44 : vector<1xf32> to vector<1x1x1xf32>
    %46 = vector.extract %45[0, 0, 0] : f32 from vector<1x1x1xf32>
    %47 = vector.broadcast %46 : f32 to vector<1x1x1xf32>
    %c0_15 = arith.constant 0 : index
    %c0_16 = arith.constant 0 : index
    %c0_17 = arith.constant 0 : index
    %48 = vector.load %arg5[%c0_15, %c0_16, %c0_17] : memref<1x1x1xf32, #tpu.memory_space<vmem>>, vector<1x1x1xf32>
    tpu.vector_store %arg5[%c0_15, %c0_16, %c0_17], %47 {strides = array<i32>} : memref<1x1x1xf32, #tpu.memory_space<vmem>>, vector<1x1x1xf32>,
    %cst_18 = arith.constant 0.000000e+00 : f32
    %49 = vector.shape_cast %7 : vector<8x1xi1> to vector<8x1xi1>
    %50 = vector.broadcast %49 : vector<8x1xi1> to vector<8x16xi1>
    %51 = vector.broadcast %cst_18 : f32 to vector<8x16xf32>
    %52 = arith.select %50, %1, %51 : vector<8x16xi1>, vector<8x16xf32>
    %cst_19 = arith.constant dense<0.000000e+00> : vector<16xf32>
    %53 = vector.multi_reduction <add>, %52, %cst_19 [0] : vector<8x16xf32> to vector<16xf32>
    %54 = vector.shape_cast %53 : vector<16xf32> to vector<1x16xf32>
    %55 = vector.shape_cast %54 : vector<1x16xf32> to vector<1x1x16xf32>
    %c0_20 = arith.constant 0 : index
    %c0_21 = arith.constant 0 : index
    %c0_22 = arith.constant 0 : index
    %56 = vector.load %arg4[%c0_20, %c0_21, %c0_22] : memref<1x1x16xf32, #tpu.memory_space<vmem>>, vector<1x1x16xf32>
    tpu.vector_store %arg4[%c0_20, %c0_21, %c0_22], %55 {strides = array<i32>} : memref<1x1x16xf32, #tpu.memory_space<vmem>>, vector<1x1x16xf32>,
    return
  }
  func.func @transform_0(%arg0: i32) -> (i32, i32) {
    %c0_i32 = arith.constant 0 : i32
    %c0_i32_0 = arith.constant 0 : i32
    return %arg0, %c0_i32 : i32, i32
  }
  func.func @transform_1(%arg0: i32) -> (i32, i32) {
    %c0_i32 = arith.constant 0 : i32
    %c0_i32_0 = arith.constant 0 : i32
    return %arg0, %c0_i32 : i32, i32
  }
  func.func @transform_2(%arg0: i32) -> (i32, i32, i32) {
    %c0_i32 = arith.constant 0 : i32
    %c0_i32_0 = arith.constant 0 : i32
    %c0_i32_1 = arith.constant 0 : i32
    return %arg0, %c0_i32, %c0_i32_0 : i32, i32, i32
  }
  func.func @transform_3(%arg0: i32) -> (i32, i32, i32) {
    %c0_i32 = arith.constant 0 : i32
    %c0_i32_0 = arith.constant 0 : i32
    %c0_i32_1 = arith.constant 0 : i32
    return %arg0, %c0_i32, %c0_i32_0 : i32, i32, i32
  }
  func.func @transform_4(%arg0: i32) -> (i32, i32, i32) {
    %c0_i32 = arith.constant 0 : i32
    %c0_i32_0 = arith.constant 0 : i32
    %c0_i32_1 = arith.constant 0 : i32
    return %arg0, %c0_i32, %c0_i32_0 : i32, i32, i32
  }
}

</mosaic_0001>

<bundles_post_ra>
// kernel: tpu_custom_call.1
= control target key start
LH: loop header
LB: loop body
LE: loop exit
PB: predicated region body
PF: predicated region fallthrough
CT: control target
= control target key end

     0   :  { %10 = vsyncpa [#allocation3], 0  ;;  %s379_s0 = inlined_call_operand.hbm [shape: f32[8,16], index: 0, kind: input, shape index: {}]   ;;  %s380_s1 = inlined_call_operand.hbm [shape: f32[8,16], index: 1, kind: input, shape index: {}]   ;;  %s381_s2 = inlined_call_operand.hbm [shape: f32[1,1,8], index: 2, kind: output, shape index: {0}]   ;;  %s382_s3 = inlined_call_operand.hbm [shape: f32[1,1,16], index: 3, kind: output, shape index: {1}]   ;;  %s383_s4 = inlined_call_operand.hbm [shape: f32[1,1,1], index: 4, kind: output, shape index: {2}]  }
   0x1   :  { %11 = vsyncpa [#allocation6], 0 }
   0x2   :  { %12 = vsyncpa [#allocation4], 0 }
   0x3   :  { %13 = vsyncpa [#allocation9], 0  ;;  %s322_s15 = smov [#allocation2]   ;;  %s323_s17 = smov [#allocation5]  }
   0x4   :  { %s20_s16 = sshll.u32 %s322_s15, 4  ;;  %s30_s18 = sshll.u32 %s323_s17, 4  ;;  %s21_s16 = int_to_ptr.vmem [resolvable:$true] %s20_s16  ;;  %s31_s18 = int_to_ptr.vmem [resolvable:$true] %s30_s18 }
   0x5   :  { %s222_s19 = scalar_lea.vmem %s21_s16, 128  ;;  %p227_p1 = scmp.lt.s32.totalorder %s21_s16, %s21_s16 }
   0x6   :  { %p223_p0 = scmp.ne.s32.totalorder %s21_s16, %s222_s19  ;;  %p228_p2 = scmp.lt.s32.totalorder %s222_s19, %s222_s19 }
   0x8   :  { %p229_p3 = por %p228_p2, %p227_p1 }
   0xa   :  { %p230_p4 = pnand %p229_p3, %p223_p0 }
   0xc   :  { %233 = shalt.err (!%p230_p4)
}
   0xd   :  { %23 = dma.hbm_to_vmem [thread:$0]  %s379_s0, 128, %s21_s16, [#allocation3]  }
   0xe   :  { %s242_s22 = scalar_lea.vmem %s31_s18, 128  ;;  %p247_p6 = scmp.lt.s32.totalorder %s31_s18, %s31_s18 }
   0xf   :  { %p243_p5 = scmp.ne.s32.totalorder %s31_s18, %s242_s22  ;;  %p248_p7 = scmp.lt.s32.totalorder %s242_s22, %s242_s22 }
  0x11   :  { %p249_p8 = por %p248_p7, %p247_p6 }
  0x13   :  { %p250_p9 = pnand %p249_p8, %p243_p5 }
  0x15   :  { %253 = shalt.err (!%p250_p9)
}
  0x16   :  { %33 = dma.hbm_to_vmem [thread:$0]  %s380_s1, 128, %s31_s18, [#allocation6]  }
  0x17   :  { %314 = dma.done.wait [#allocation3], 128  }
  0x18   :  { %315 = vsyncadd [#allocation3], 4294967168 }
  0x19   :  { %316 = dma.done.wait [#allocation6], 128  }
  0x1a   :  { %317 = vsyncadd [#allocation6], 4294967168  ;;  %vm48_vm0 = vcmask 130048   ;;  %v358_v0 = vld [vmem:[#allocation5] sm:$0xff]  ;;  %v40_v1 = vld [vmem:[#allocation2] sm:$0xff]  ;;  %v61_v4 = vlaneseq  ;;  %vm131_vm3 = vcmask 7168  }
  0x1b   :  { %v63_v2 = vsel %vm48_vm0, %v358_v0, -inf  ;;  %v49_v3 = vsel %vm48_vm0, %v40_v1, -inf  ;;  %vm143_vm5 = vcmask 0   ;;  %v148_v45 = vsel %vm48_vm0, %v358_v0, 0.0  ;;  %s324_s1 = smov [#allocation8]  }
  0x1c   :  { %64 = vmax.xlane.f32.xlu0 %v63_v2  ;;  %v62_v5 = vand.u32 127, %v61_v4  ;;  %v149_v46 = vrot.slane %v148_v45, 4  ;;  %vm155_vm6 = vcmask 122880   ;;  %s173_s25 = sshll.u32 %s324_s1, 4  ;;  %s174_s25 = int_to_ptr.vmem [resolvable:$true] %s173_s25 }
  0x1d   :  { %s254_s26 = scalar_lea.vmem %s174_s25, 16  ;;  %s258_s27 = scalar_lea.vmem %s174_s25, 32 }
  0x1e   :  { %v150_v47 = vadd.f32 %v149_v46, %v148_v45  ;;  %p255_p10 = scmp.ne.s32.totalorder %s174_s25, %s254_s26  ;;  %p259_p11 = scmp.lt.s32.totalorder %s174_s25, %s174_s25 }
  0x1f   :  { %p260_p12 = scmp.lt.s32.totalorder %s258_s27, %s254_s26 }
  0x20   :  { %50 = vmax.xlane.f32.xlu0 %v49_v3  ;;  %v151_v48 = vrot.slane %v150_v47, 2 }
  0x21   :  { %p261_p13 = por %p260_p12, %p259_p11 }
  0x22   :  { %v152_v49 = vadd.f32 %v151_v48, %v150_v47 }
  0x23   :  { %p262_p0 = pnand %p261_p13, %p255_p10 }
  0x24   :  { %v153_v50 = vrot.slane %v152_v49, 1 }
  0x26   :  { %v154_v51 = vadd.f32 %v153_v50, %v152_v49 }
  0x28   :  { %156 = vst.msk [vmem:[#allocation8] sm:$0x1] %vm155_vm6, %v154_v51 }
  0xa5   :  { %v65_v6 = vpop.xlane.xlu0 %64 }
  0xa6   :  { %vm66_vm1 = vcmp.eq.f32.partialorder %v358_v0, %v65_v6 }
  0xa7   :  { %v67_v7 = vsel %vm66_vm1, %v62_v5, 16 }
  0xa8   :  { %v68_v8 = vsel %vm48_vm0, %v67_v7, 2147483647 }
  0xa9   :  { %v51_v9 = vpop.xlane.xlu0 %50  ;;  %v70_v10 = vshra.s32 %v68_v8, 16  ;;  %v69_v18 = vand.u32 65535, %v68_v8 }
  0xaa   :  { %v52_v11 = vsub.f32 %v40_v1, %v51_v9 }
  0xab   :  { %v72_v12 = vcvt.s32.f32 %v70_v10  ;;  %v71_v20 = vcvt.s32.f32 %v69_v18 }
  0xac   :  { %v53_v13 = vmul.f32 1.442695, %v52_v11 }
  0xad   :  { %73 = vmin.xlane.f32.xlu1 %v72_v12 }
  0xae   :  { %208 = vpow2.f32 %v53_v13 }
  0xbb   :  { %v209_v14 = vpop.eup %208 }
  0xbc   :  { %v55_v15 = vsel %vm48_vm0, %v209_v14, 0.0  ;;  %v123_v16 = vmul.f32 %v209_v14, %v52_v11 }
  0xbd   :  { %56 = vadd.xlane.f32.xlu1 %v55_v15 }
  0xbe   :  { %v124_v17 = vsel %vm48_vm0, %v123_v16, 0.0 }
  0xbf   :  { %125 = vadd.xlane.f32.xlu0 %v124_v17 }
 0x136   :  { %v74_v19 = vpop.xlane.xlu1 %73 }
 0x137   :  { %vm75_vm2 = vcmp.eq.f32.partialorder %v72_v12, %v74_v19  ;;  %v80_v30 = vcvt.f32.s32 %v74_v19 }
 0x138   :  { %v76_v21 = vsel %vm75_vm2, %v71_v20, inf }
 0x139   :  { %77 = vmin.xlane.f32.xlu1 %v76_v21  ;;  %v81_v32 = vshll.u32 %v80_v30, 16 }
 0x146   :  { %v57_v22 = vpop.xlane.xlu1 %56 }
 0x147   :  { %210 = vlog2.f32 %v57_v22 }
 0x148   :  { %212 = vrcp.f32 %v57_v22  ;;  %v126_v23 = vpop.xlane.xlu0 %125 }
 0x154   :  { %v211_v24 = vpop.eup %210 }
 0x155   :  { %v213_v25 = vpop.eup %212  ;;  %v59_v27 = vmul.f32 0.6931472, %v211_v24 }
 0x156   :  { %v128_v26 = vmul.f32 %v213_v25, %v126_v23 }
 0x157   :  { %v60_v52 = vadd.f32 %v59_v27, %v51_v9 }
 0x158   :  { %v129_v28 = vsub.f32 %v59_v27, %v128_v26 }
 0x15a   :  { %v132_v29 = vsel %vm131_vm3, %v129_v28, 0.0 }
 0x15b   :  { %133 = vadd.xlane.f32.xlu0 %v132_v29 }
 0x1c2   :  { %v78_v31 = vpop.xlane.xlu1 %77 }
 0x1c3   :  { %v79_v33 = vcvt.f32.s32 %v78_v31 }
 0x1c5   :  { %v82_v34 = vadd.s32 %v81_v32, %v79_v33 }
 0x1c7   :  { %vm83_vm4 = vcmp.eq.s32.totalorder %v62_v5, %v82_v34 }
 0x1c8   :  { %v84_v35 = vsel %vm83_vm4, %v40_v1, 0.0 }
 0x1c9   :  { %v85_v36 = vsel %vm48_vm0, %v84_v35, 0.0 }
 0x1ca   :  { %86 = vadd.xlane.f32.xlu1 %v85_v36 }
 0x1e4   :  { %v134_v37 = vpop.xlane.xlu0 %133 }
 0x1e5   :  { %v135_v38 = vrot.slane %v134_v37, 4 }
 0x1e7   :  { %v136_v39 = vadd.f32 %v135_v38, %v134_v37 }
 0x1e9   :  { %v137_v40 = vrot.slane %v136_v39, 2 }
 0x1eb   :  { %v138_v41 = vadd.f32 %v137_v40, %v136_v39 }
 0x1ed   :  { %v139_v42 = vrot.slane %v138_v41, 1 }
 0x1ef   :  { %v140_v43 = vadd.f32 %v139_v42, %v138_v41 }
 0x1f1   :  { %200 = vpush %v140_v43 }
 0x222   :  { %s201_s0 = spop %200 }
 0x223   :  { %v142_v44 = vstv %s201_s0 }
 0x224   :  { %144 = vst.msk [vmem:[#allocation10] sm:$0x1] %vm143_vm5, %v142_v44 }
 0x253   :  { %v87_v53 = vpop.xlane.xlu1 %86 }
 0x254   :  { %265 = shalt.err (!%p262_p0)
}
 0x255   :  { %176 = dma.vmem_to_hbm [thread:$0]  %s174_s25, 16, %s382_s3, [#allocation9]   ;;  %v88_v54 = vsub.f32 %v60_v52, %v87_v53 }
 0x256   :  { %s325_s30 = smov [#allocation10]  }
 0x257   :  { %s183_s5 = sshll.u32 %s325_s30, 4  ;;  %89 = vxpose.xlu0.b32.start.end [1/1] (short) (narrow) %v88_v54, 8  ;;  %s184_s5 = int_to_ptr.vmem [resolvable:$true] %s183_s5 }
 0x258   :  { %s274_s6 = scalar_lea.vmem %s184_s5, 16  ;;  %s278_s7 = scalar_lea.vmem %s184_s5, 32 }
 0x259   :  { %p275_p1 = scmp.ne.s32.totalorder %s184_s5, %s274_s6  ;;  %p279_p2 = scmp.lt.s32.totalorder %s184_s5, %s184_s5 }
 0x25a   :  { %p280_p3 = scmp.lt.s32.totalorder %s278_s7, %s274_s6 }
 0x25c   :  { %p281_p4 = por %p280_p3, %p279_p2 }
 0x25e   :  { %p282_p5 = pnand %p281_p4, %p275_p1 }
 0x260   :  { %285 = shalt.err (!%p282_p5)
}
 0x261   :  { %186 = dma.vmem_to_hbm [thread:$0]  %s184_s5, 16, %s383_s4, [#allocation9]   ;;  %vm121_vm7 = vcmask 57344  }
 0x262   :  { %s326_s10 = smov [#allocation7]  }
 0x263   :  { %s163_s11 = sshll.u32 %s326_s10, 4  ;;  %s164_s11 = int_to_ptr.vmem [resolvable:$true] %s163_s11 }
 0x264   :  { %s294_s3 = scalar_lea.vmem %s164_s11, 16  ;;  %s298_s12 = scalar_lea.vmem %s164_s11, 32 }
 0x265   :  { %p295_p6 = scmp.ne.s32.totalorder %s164_s11, %s294_s3  ;;  %p299_p7 = scmp.lt.s32.totalorder %s164_s11, %s164_s11 }
 0x266   :  { %p300_p8 = scmp.lt.s32.totalorder %s298_s12, %s294_s3 }
 0x268   :  { %p301_p9 = por %p300_p8, %p299_p7 }
 0x26a   :  { %p302_p10 = pnand %p301_p9, %p295_p6 }
 0x2d3   :  { %v105_v55 = vpop.trf.xlu0 }
 0x2d4   :  { %122 = vst.msk [vmem:[#allocation7] sm:$0x1] %vm121_vm7, %v105_v55 }
 0x2d5   :  { %305 = shalt.err (!%p302_p10)
}
 0x2d6   :  { %166 = dma.vmem_to_hbm [thread:$0]  %s164_s11, 16, %s381_s2, [#allocation4]  }
 0x2d7   :  { %318 = dma.done.wait [#allocation4], 16  }
 0x2d8   :  { %319 = vsyncadd [#allocation4], 4294967280 }
 0x2d9   :  { %320 = dma.done.wait [#allocation9], 32  }
 0x2da   :  { %321 = vsyncadd [#allocation9], 4294967264 }
 0x2db   :  { %196 = vsyncpa [#allocation3], 1 }
 0x2dc   :  { %197 = vsyncpa [#allocation6], 1 }
 0x2dd   :  { %198 = vsyncpa [#allocation4], 1 }
 0x2de   :  { %199 = vsyncpa [#allocation9], 1 }

</bundles_post_ra>
